<compile_context>
chip_gen: v7x
topology: tpu7x:2x2x1
jax: 0.10.0
libtpu: 0.0.40
codegen_flags: <defaults>
</compile_context>

<pallas_src>
import functools
import math

import jax
import jax.numpy as jnp
from jax.experimental import pallas as pl
from jax.experimental.pallas import tpu as pltpu


# -----------------------------------------------------------------------------
# Fused path: one pass over x (read once, write once).  grid = (N,)
# -----------------------------------------------------------------------------
def _se_fused_kernel(x_ref, w1t_ref, w2t_ref, o_ref, *, inv_hw):
    xb = x_ref[0].astype(jnp.float32)                          # (C, HW)
    pooled = jnp.sum(xb, axis=1, keepdims=True) * inv_hw       # (C, 1)
    h = jnp.maximum(
        jnp.dot(w1t_ref[...], pooled, preferred_element_type=jnp.float32),
        0.0)                                                   # (Cr, 1)
    gate = jax.nn.sigmoid(
        jnp.dot(w2t_ref[...], h, preferred_element_type=jnp.float32))  # (C, 1)
    o_ref[0] = (xb * gate).astype(o_ref.dtype)


# -----------------------------------------------------------------------------
# Streaming phase 1: pooled channel sum over HW tiles + FCs at the last tile.
# grid = (N, num_hw_tiles)   ["parallel", "arbitrary"]
# The (1, C, 1) output block is resident across the HW axis and doubles as the
# accumulator (no separate scratch buffer).
# -----------------------------------------------------------------------------
def _se_pool_fc_kernel(x_ref, w1t_ref, w2t_ref, s_ref, *, hw, thw, ragged):
    t = pl.program_id(1)

    @pl.when(t == 0)
    def _init():
        s_ref[...] = jnp.zeros_like(s_ref)

    xb = x_ref[0].astype(jnp.float32)                          # (C, thw)
    if ragged:  # static flag: mask garbage lanes of the padded last tile
        col = jax.lax.broadcasted_iota(jnp.int32, xb.shape, 1) + t * thw
        xb = jnp.where(col < hw, xb, 0.0)
    s_ref[0] += jnp.sum(xb, axis=1, keepdims=True)             # (C, 1)

    @pl.when(t == pl.num_programs(1) - 1)
    def _finalize():
        pooled = s_ref[0] * (1.0 / hw)                         # (C, 1)
        h = jnp.maximum(
            jnp.dot(w1t_ref[...], pooled, preferred_element_type=jnp.float32),
            0.0)                                               # (Cr, 1)
        s_ref[0] = jax.nn.sigmoid(
            jnp.dot(w2t_ref[...], h, preferred_element_type=jnp.float32))


# -----------------------------------------------------------------------------
# Streaming phase 2: y = x * s (gate broadcast along lanes).
# grid = (N, num_hw_tiles)   ["parallel", "parallel"]
# -----------------------------------------------------------------------------
def _se_scale_kernel(x_ref, s_ref, o_ref):
    o_ref[0] = (x_ref[0].astype(jnp.float32) * s_ref[0]).astype(o_ref.dtype)


# -----------------------------------------------------------------------------
# Wrapper: PyTorch-style NCHW in / NCHW out.
# -----------------------------------------------------------------------------
def se_block(x_nchw, w1, w2, *, hw_tile_bytes=2 << 20, fused_limit_bytes=3 << 20):
    """SEBlock forward.

    x_nchw : (N, C, H, W)
    w1     : (C, C_r)  = fc[0].weight.T   (bias=False)
    w2     : (C_r, C)  = fc[2].weight.T   (bias=False)
    """
    n, c, h, w = x_nchw.shape
    cr = w1.shape[1]
    assert w1.shape == (c, cr) and w2.shape == (cr, c)

    hw = h * w
    x = x_nchw.reshape(n, c, hw)                 # free reshape: no transpose/copy
    w1t = jnp.transpose(w1).astype(jnp.float32)  # (Cr, C)
    w2t = jnp.transpose(w2).astype(jnp.float32)  # (C, Cr)
    itemsize = x.dtype.itemsize

    # ---- fused single-pass path: x read once, y written once ----
    if c * hw * itemsize <= fused_limit_bytes:
        y = pl.pallas_call(
            functools.partial(_se_fused_kernel, inv_hw=1.0 / hw),
            out_shape=jax.ShapeDtypeStruct((n, c, hw), x.dtype),
            grid=(n,),
            in_specs=[
                pl.BlockSpec((1, c, hw), lambda b: (b, 0, 0)),
                pl.BlockSpec((cr, c), lambda b: (0, 0)),
                pl.BlockSpec((c, cr), lambda b: (0, 0)),
            ],
            out_specs=pl.BlockSpec((1, c, hw), lambda b: (b, 0, 0)),
            compiler_params=pltpu.CompilerParams(
                dimension_semantics=("parallel",)),
        )(x, w1t, w2t)
        return y.reshape(n, c, h, w)

    # ---- streaming path: HW tiles on the lane axis, ~hw_tile_bytes each ----
    # TODO(synk): for very large C (c * 128 * itemsize > hw_tile_bytes) add a
    # channel grid axis to cap per-tile bytes; N is already a grid axis, so
    # batch size never inflates the tile footprint.
    max_lanes = max(128, (hw_tile_bytes // (c * itemsize)) // 128 * 128)
    if hw <= max_lanes:
        thw = hw                                  # single full-extent tile
    else:
        thw = max_lanes                           # multiple of 128 -> unmasked vst
    num_tiles = pl.cdiv(hw, thw)
    ragged = (hw % thw) != 0                      # last tile masked in-kernel

    # phase 1: pooled sum + FC1/ReLU/FC2/sigmoid -> gate s of shape (N, C, 1)
    s = pl.pallas_call(
        functools.partial(_se_pool_fc_kernel, hw=hw, thw=thw, ragged=ragged),
        out_shape=jax.ShapeDtypeStruct((n, c, 1), jnp.float32),
        grid=(n, num_tiles),
        in_specs=[
            pl.BlockSpec((1, c, thw), lambda b, t: (b, 0, t)),
            pl.BlockSpec((cr, c), lambda b, t: (0, 0)),
            pl.BlockSpec((c, cr), lambda b, t: (0, 0)),
        ],
        out_specs=pl.BlockSpec((1, c, 1), lambda b, t: (b, 0, 0)),
        compiler_params=pltpu.CompilerParams(
            dimension_semantics=("parallel", "arbitrary")),
    )(x, w1t, w2t)

    # phase 2: y = x * s, fully parallel grid
    y = pl.pallas_call(
        _se_scale_kernel,
        out_shape=jax.ShapeDtypeStruct((n, c, hw), x.dtype),
        grid=(n, num_tiles),
        in_specs=[
            pl.BlockSpec((1, c, thw), lambda b, t: (b, 0, t)),
            pl.BlockSpec((1, c, 1), lambda b, t: (b, 0, 0)),
        ],
        out_specs=pl.BlockSpec((1, c, thw), lambda b, t: (b, 0, t)),
        compiler_params=pltpu.CompilerParams(
            dimension_semantics=("parallel", "parallel")),
    )(x, s)
    return y.reshape(n, c, h, w)


# -----------------------------------------------------------------------------
# Pure-JAX reference (matches the PyTorch module semantics).
# -----------------------------------------------------------------------------
def _se_block_ref(x, w1, w2):
    pooled = jnp.mean(x.astype(jnp.float32), axis=(2, 3))      # (N, C)
    hid = jnp.maximum(pooled @ w1, 0.0)
    s = jax.nn.sigmoid(hid @ w2)                               # (N, C)
    return (x.astype(jnp.float32) * s[:, :, None, None]).astype(x.dtype)


def _init_weights(key, c, cr):
    # nn.Linear(bias=False) default init: U(-1/sqrt(fan_in), +1/sqrt(fan_in)),
    # stored pre-transposed as (fan_in, fan_out).
    k1, k2 = jax.random.split(key)
    b1 = 1.0 / math.sqrt(c)
    b2 = 1.0 / math.sqrt(cr)
    w1 = jax.random.uniform(k1, (c, cr), jnp.float32, minval=-b1, maxval=b1)
    w2 = jax.random.uniform(k2, (cr, c), jnp.float32, minval=-b2, maxval=b2)
    return w1, w2


if __name__ == "__main__":
    key = jax.random.PRNGKey(0)
    k1, k2, k3, k4 = jax.random.split(key, 4)
    reduction = 4

    # --- fused single-pass path (default for small feature maps) ---
    N, C, H, W = 2, 128, 16, 16
    x = jax.random.normal(k1, (N, C, H, W), jnp.float32)
    w1, w2 = _init_weights(k2, C, C // reduction)

    y = jax.block_until_ready(jax.jit(se_block)(x, w1, w2))
    assert y.shape == (N, C, H, W)
    assert bool(jnp.all(jnp.isfinite(y)))
    y_ref = _se_block_ref(x, w1, w2)
    err = float(jnp.max(jnp.abs(y - y_ref)))
    assert bool(jnp.allclose(y, y_ref, atol=1e-2, rtol=1e-2)), err

    # --- streaming path with a ragged last HW tile (forced) ---
    N2, C2, H2, W2 = 2, 64, 20, 18            # HW = 360, not a multiple of 128
    x2 = jax.random.normal(k3, (N2, C2, H2, W2), jnp.float32)
    w1b, w2b = _init_weights(k4, C2, C2 // reduction)

    stream_fwd = jax.jit(functools.partial(
        se_block, fused_limit_bytes=0, hw_tile_bytes=C2 * 4 * 128))
    y2 = jax.block_until_ready(stream_fwd(x2, w1b, w2b))
    assert y2.shape == (N2, C2, H2, W2)
    y2_ref = _se_block_ref(x2, w1b, w2b)
    err2 = float(jnp.max(jnp.abs(y2 - y2_ref)))
    assert bool(jnp.allclose(y2, y2_ref, atol=1e-2, rtol=1e-2)), err2

    print("KERNEL_OK")
</pallas_src>

<mosaic_0001>
module attributes {stable_mosaic.version = 11 : i64} {
  func.func @_se_fused_kernel(%arg0: i32, %arg1: memref<1x128x256xf32, #tpu.memory_space<vmem>>, %arg2: memref<32x128xf32, #tpu.memory_space<vmem>>, %arg3: memref<128x32xf32, #tpu.memory_space<vmem>>, %arg4: memref<1x128x256xf32, #tpu.memory_space<vmem>>) attributes {dimension_semantics = [#tpu.dimension_semantics<parallel>], iteration_bounds = array<i64: 2>, scalar_prefetch = 0 : i64, scratch_operands = 0 : i64, tpu.core_type = #tpu.core_type<tc>, window_params = [{transform_indices = @transform_0, window_bounds = array<i64: 1, 128, 256>}, {pipeline_mode = #tpu.pipeline_mode<synchronous>, transform_indices = @transform_1, window_bounds = array<i64: 32, 128>}, {pipeline_mode = #tpu.pipeline_mode<synchronous>, transform_indices = @transform_2, window_bounds = array<i64: 128, 32>}, {transform_indices = @transform_3, window_bounds = array<i64: 1, 128, 256>}]} {
    %c0 = arith.constant 0 : index
    %c0_0 = arith.constant 0 : index
    %c0_1 = arith.constant 0 : index
    %0 = vector.load %arg1[%c0, %c0_0, %c0_1] : memref<1x128x256xf32, #tpu.memory_space<vmem>>, vector<1x128x256xf32>
    %1 = vector.shape_cast %0 : vector<1x128x256xf32> to vector<128x256xf32>
    %cst = arith.constant dense<0.000000e+00> : vector<128xf32>
    %2 = vector.multi_reduction <add>, %1, %cst [1] : vector<128x256xf32> to vector<128xf32>
    %3 = vector.shape_cast %2 : vector<128xf32> to vector<128x1xf32>
    %cst_2 = arith.constant 3.906250e-03 : f32
    %4 = vector.broadcast %cst_2 : f32 to vector<128x1xf32>
    %5 = arith.mulf %3, %4 : vector<128x1xf32>
    %c0_3 = arith.constant 0 : index
    %c0_4 = arith.constant 0 : index
    %6 = vector.load %arg2[%c0_3, %c0_4] : memref<32x128xf32, #tpu.memory_space<vmem>>, vector<32x128xf32>
    %cst_5 = arith.constant dense<0.000000e+00> : vector<32x1xf32>
    %7 = tpu.matmul %6, %5, %cst_5 {dimension_numbers = #tpu.dot_dimension_numbers<[1], [0], [0], [1], [0, 0, 1, 1], [], []>} : vector<32x128xf32>, vector<128x1xf32>, vector<32x1xf32> -> vector<32x1xf32>
    %cst_6 = arith.constant 0.000000e+00 : f32
    %8 = vector.broadcast %cst_6 : f32 to vector<32x1xf32>
    %9 = arith.maximumf %7, %8 : vector<32x1xf32>
    %c0_7 = arith.constant 0 : index
    %c0_8 = arith.constant 0 : index
    %10 = vector.load %arg3[%c0_7, %c0_8] : memref<128x32xf32, #tpu.memory_space<vmem>>, vector<128x32xf32>
    %cst_9 = arith.constant dense<0.000000e+00> : vector<128x1xf32>
    %11 = tpu.matmul %10, %9, %cst_9 {dimension_numbers = #tpu.dot_dimension_numbers<[1], [0], [0], [1], [0, 0, 1, 1], [], []>} : vector<128x32xf32>, vector<32x1xf32>, vector<128x1xf32> -> vector<128x1xf32>
    %12 = arith.negf %11 : vector<128x1xf32>
    %13 = math.exp %12 : vector<128x1xf32>
    %cst_10 = arith.constant 1.000000e+00 : f32
    %14 = vector.broadcast %cst_10 : f32 to vector<128x1xf32>
    %15 = arith.addf %14, %13 : vector<128x1xf32>
    %16 = arith.divf %14, %15 : vector<128x1xf32>
    %17 = vector.broadcast %16 : vector<128x1xf32> to vector<128x256xf32>
    %18 = arith.mulf %1, %17 : vector<128x256xf32>
    %c0_11 = arith.constant 0 : index
    %c0_12 = arith.constant 0 : index
    %c0_13 = arith.constant 0 : index
    %19 = vector.load %arg4[%c0_11, %c0_12, %c0_13] : memref<1x128x256xf32, #tpu.memory_space<vmem>>, vector<1x128x256xf32>
    %20 = vector.shape_cast %19 : vector<1x128x256xf32> to vector<128x256xf32>
    %21 = vector.shape_cast %18 : vector<128x256xf32> to vector<1x128x256xf32>
    tpu.vector_store %arg4[%c0_11, %c0_12, %c0_13], %21 {strides = array<i32>} : memref<1x128x256xf32, #tpu.memory_space<vmem>>, vector<1x128x256xf32>,
    return
  }
  func.func @transform_0(%arg0: i32) -> (i32, i32, i32) {
    %c0_i32 = arith.constant 0 : i32
    %c0_i32_0 = arith.constant 0 : i32
    %c0_i32_1 = arith.constant 0 : i32
    return %arg0, %c0_i32, %c0_i32_0 : i32, i32, i32
  }
  func.func @transform_1(%arg0: i32) -> (i32, i32) {
    %c0_i32 = arith.constant 0 : i32
    %c0_i32_0 = arith.constant 0 : i32
    %c0_i32_1 = arith.constant 0 : i32
    return %c0_i32, %c0_i32_0 : i32, i32
  }
  func.func @transform_2(%arg0: i32) -> (i32, i32) {
    %c0_i32 = arith.constant 0 : i32
    %c0_i32_0 = arith.constant 0 : i32
    %c0_i32_1 = arith.constant 0 : i32
    return %c0_i32, %c0_i32_0 : i32, i32
  }
  func.func @transform_3(%arg0: i32) -> (i32, i32, i32) {
    %c0_i32 = arith.constant 0 : i32
    %c0_i32_0 = arith.constant 0 : i32
    %c0_i32_1 = arith.constant 0 : i32
    return %arg0, %c0_i32, %c0_i32_0 : i32, i32, i32
  }
}

</mosaic_0001>

<bundles_post_ra>
// kernel: se_block.1
= control target key start
LH: loop header
LB: loop body
LE: loop exit
PB: predicated region body
PF: predicated region fallthrough
CT: control target
= control target key end

     0   :  { %s1164_s12 = smov 0   ;;  %s1460_s0 = inlined_call_operand.vmem [shape: f32[2,128,256], index: 0, kind: input, shape index: {}]   ;;  %s1461_s1 = inlined_call_operand.vmem [shape: f32[32,128], index: 1, kind: input, shape index: {}]   ;;  %s1462_s2 = inlined_call_operand.vmem [shape: f32[128,32], index: 2, kind: input, shape index: {}]   ;;  %s1463_s3 = inlined_call_operand.vmem [shape: f32[2,128,256], index: 3, kind: output, shape index: {}]  }
   0x1 LB: > { %s865_s13 = sadd.s32 4294967295, %s1141_s12   ;;  %p869_p0 = scmp.ge.s32.totalorder %s1141_s12, 1  ;;  %s1141_s12 = sphi %s1164_s12, %s13_s12  }
   0x2   : > { %p137_p1 = scmp.lt.s32.totalorder %s1141_s12, 3 }
   0x4   : > { %p138_p2 = pnand %p869_p0, %p137_p1 }
   0x5   : > { %p161_p3 = scmp.lt.s32.totalorder (!%p138_p2), %s865_s13, 1  ;;  %v267_v48 = vld [vmem:[%s1461_s1] sm:$0xff] (!%p138_p2)  ;;  %vm376_vm0 = vcmask (!%p138_p2), 261120  }
   0x6   : > { %141 = sbr.rel (%p138_p2) target bundleno = 836 (0x344), region = 32  ;;  %982 = vmatprep.mubr.f32.mxu0 (!%p138_p2), %v267_v48 }
   0xd   : > { %s1465_s13 = smov (!%p161_p3, %s865_s13), 1 }
   0xe   : > { %s908_s14 = sshll.u32 %s1465_s13, 8 }
   0xf   : > { %s1180_s17 = scalar_lea.vmem %s1460_s0, %s908_s14  ;;  %s1391_s9 = scalar_lea.vmem %s1463_s3, %s908_s14 }
  0x10   : > { %v1183_v0 = vld [vmem:[%s1180_s17 + $0x20] sm:$0xff]  ;;  %v1186_v1 = vld [vmem:[%s1180_s17 + $0x28] sm:$0xff]  ;;  %v1197_v5 = vld [vmem:[%s1180_s17 + $0x30] sm:$0xff] }
  0x11   : > { %v1189_v2 = vld [vmem:[%s1180_s17] sm:$0xff]  ;;  %v209_v3 = vadd.f32 %v1186_v1, %v1183_v0  ;;  %v1194_v4 = vld [vmem:[%s1180_s17 + $0x8] sm:$0xff]  ;;  %v1200_v6 = vld [vmem:[%s1180_s17 + $0x38] sm:$0xff] }
  0x12   : > { %v203_v7 = vadd.f32 %v1194_v4, %v1189_v2  ;;  %v1205_v8 = vld [vmem:[%s1180_s17 + $0x10] sm:$0xff]  ;;  %v1208_v9 = vld [vmem:[%s1180_s17 + $0x18] sm:$0xff]  ;;  %v212_v10 = vadd.f32 %v1200_v6, %v1197_v5  ;;  %v1221_v14 = vld [vmem:[%s1180_s17 + $0x40] sm:$0xff] }
  0x13   : > { %210 = vadd.xlane.f32.xlu1 %v209_v3  ;;  %v206_v11 = vadd.f32 %v1208_v9, %v1205_v8  ;;  %v1215_v12 = vld [vmem:[%s1180_s17 + $0x50] sm:$0xff]  ;;  %v1218_v13 = vld [vmem:[%s1180_s17 + $0x58] sm:$0xff]  ;;  %v1224_v15 = vld [vmem:[%s1180_s17 + $0x48] sm:$0xff] }
  0x14   : > { %204 = vadd.xlane.f32.xlu0 %v203_v7  ;;  %v218_v16 = vadd.f32 %v1218_v13, %v1215_v12  ;;  %v215_v17 = vadd.f32 %v1224_v15, %v1221_v14  ;;  %v1231_v18 = vld [vmem:[%s1180_s17 + $0x70] sm:$0xff]  ;;  %v1234_v19 = vld [vmem:[%s1180_s17 + $0x78] sm:$0xff]  ;;  %v1237_v20 = vld [vmem:[%s1180_s17 + $0x60] sm:$0xff] }
  0x15   : > { %v1240_v21 = vld [vmem:[%s1180_s17 + $0x68] sm:$0xff]  ;;  %v224_v22 = vadd.f32 %v1234_v19, %v1231_v18  ;;  %v1247_v24 = vld [vmem:[%s1180_s17 + $0x90] sm:$0xff]  ;;  %v1250_v25 = vld [vmem:[%s1180_s17 + $0x98] sm:$0xff] }
  0x16   : > { %v221_v23 = vadd.f32 %v1240_v21, %v1237_v20  ;;  %v1253_v26 = vld [vmem:[%s1180_s17 + $0x80] sm:$0xff]  ;;  %v1256_v27 = vld [vmem:[%s1180_s17 + $0x88] sm:$0xff]  ;;  %v230_v28 = vadd.f32 %v1250_v25, %v1247_v24  ;;  %v1263_v30 = vld [vmem:[%s1180_s17 + $0xb0] sm:$0xff] }
  0x17   : > { %213 = vadd.xlane.f32.xlu1 %v212_v10  ;;  %v227_v29 = vadd.f32 %v1256_v27, %v1253_v26  ;;  %v1266_v31 = vld [vmem:[%s1180_s17 + $0xb8] sm:$0xff]  ;;  %v1269_v32 = vld [vmem:[%s1180_s17 + $0xa0] sm:$0xff]  ;;  %v1272_v33 = vld [vmem:[%s1180_s17 + $0xa8] sm:$0xff] }
  0x18   : > { %207 = vadd.xlane.f32.xlu0 %v206_v11  ;;  %v236_v34 = vadd.f32 %v1266_v31, %v1263_v30  ;;  %v233_v35 = vadd.f32 %v1272_v33, %v1269_v32  ;;  %v1279_v36 = vld [vmem:[%s1180_s17 + $0xd0] sm:$0xff]  ;;  %v1282_v37 = vld [vmem:[%s1180_s17 + $0xd8] sm:$0xff]  ;;  %v1285_v38 = vld [vmem:[%s1180_s17 + $0xc0] sm:$0xff] }
  0x19   : > { %v1288_v39 = vld [vmem:[%s1180_s17 + $0xc8] sm:$0xff]  ;;  %v242_v40 = vadd.f32 %v1282_v37, %v1279_v36  ;;  %v1295_v42 = vld [vmem:[%s1180_s17 + $0xf0] sm:$0xff]  ;;  %v1298_v43 = vld [vmem:[%s1180_s17 + $0xf8] sm:$0xff] }
  0x1a   : > { %v239_v41 = vadd.f32 %v1288_v39, %v1285_v38  ;;  %v1301_v44 = vld [vmem:[%s1180_s17 + $0xe0] sm:$0xff]  ;;  %v1304_v45 = vld [vmem:[%s1180_s17 + $0xe8] sm:$0xff]  ;;  %v248_v46 = vadd.f32 %v1298_v43, %v1295_v42 }
  0x1b   : > { %219 = vadd.xlane.f32.xlu1 %v218_v16  ;;  %v245_v47 = vadd.f32 %v1304_v45, %v1301_v44 }
  0x1c   : > { %216 = vadd.xlane.f32.xlu0 %v215_v17 }
  0x1f   : > { %225 = vadd.xlane.f32.xlu1 %v224_v22 }
  0x20   : > { %222 = vadd.xlane.f32.xlu0 %v221_v23 }
  0x23   : > { %231 = vadd.xlane.f32.xlu1 %v230_v28 }
  0x24   : > { %228 = vadd.xlane.f32.xlu0 %v227_v29 }
  0x27   : > { %237 = vadd.xlane.f32.xlu1 %v236_v34 }
  0x28   : > { %234 = vadd.xlane.f32.xlu0 %v233_v35 }
  0x2b   : > { %243 = vadd.xlane.f32.xlu1 %v242_v40 }
  0x2c   : > { %240 = vadd.xlane.f32.xlu0 %v239_v41 }
  0x2f   : > { %249 = vadd.xlane.f32.xlu1 %v248_v46 }
  0x30   : > { %246 = vadd.xlane.f32.xlu0 %v245_v47 }
  0xa0   : > { %v211_v49 = vpop.xlane.xlu1 %210 }
  0xa1   : > { %v205_v50 = vpop.xlane.xlu0 %204  ;;  %v253_v53 = vmul.f32 0.00390625, %v211_v49 }
  0xa2   : > { %v251_v54 = vmul.f32 0.00390625, %v205_v50 }
  0xa4   : > { %v214_v51 = vpop.xlane.xlu1 %213 }
  0xa5   : > { %v208_v52 = vpop.xlane.xlu0 %207  ;;  %v254_v55 = vmul.f32 0.00390625, %v214_v51 }
  0xa6   : > { %v252_v56 = vmul.f32 0.00390625, %v208_v52 }
  0xa7   : > { %v1024_v61 = vpack.c.bf16 %v254_v55, %v253_v53 }
  0xa8   : > { %v1020_v57 = vpack.c.bf16 %v252_v56, %v251_v54  ;;  %v220_v58 = vpop.xlane.xlu1 %219 }
  0xa9   : > { %v256_v59 = vmul.f32 0.00390625, %v220_v58  ;;  %v217_v60 = vpop.xlane.xlu0 %216  ;;  %v269_v58 = vld [vmem:[%s1461_s1 + $0x10] sm:$0xff] }
  0xaa   : > { %1021 = vmatprep.subr.bf16.mxu0 %v1020_v57  ;;  %v255_v62 = vmul.f32 0.00390625, %v217_v60  ;;  %v360_v60 = vld [vmem:[%s1462_s2] sm:$0xff] }
  0xab   : > { %1023 = vmatpush3.bf16.msra.mxu0 %v1020_v57  ;;  %v268_v57 = vld [vmem:[%s1461_s1 + $0x8] sm:$0xff]  ;;  %996 = vmatprep.mubr.msk.f32.mxu1 %vm376_vm0, %v360_v60 }
  0xac   : > { %1025 = vmatprep.subr.bf16.mxu0 %v1024_v61  ;;  %v1028_v63 = vpack.c.bf16 %v256_v59, %v255_v62  ;;  %v226_v3 = vpop.xlane.xlu1 %225  ;;  %v270_v59 = vld [vmem:[%s1461_s1 + $0x18] sm:$0xff] }
  0xad   : > { %v258_v7 = vmul.f32 0.00390625, %v226_v3  ;;  %v223_v10 = vpop.xlane.xlu0 %222 }
  0xae   : > { %v257_v11 = vmul.f32 0.00390625, %v223_v10 }
  0xaf   : > { %1027 = vmatpush3.bf16.msra.mxu0 %v1024_v61 }
  0xb0   : > { %v1032_v16 = vpack.c.bf16 %v258_v7, %v257_v11  ;;  %1029 = vmatprep.subr.bf16.mxu0 %v1028_v63  ;;  %v232_v17 = vpop.xlane.xlu1 %231 }
  0xb1   : > { %v260_v22 = vmul.f32 0.00390625, %v232_v17  ;;  %v229_v23 = vpop.xlane.xlu0 %228 }
  0xb2   : > { %v259_v28 = vmul.f32 0.00390625, %v229_v23  ;;  %v361_v23 = vld [vmem:[%s1462_s2 + $0x8] sm:$0xff] }
  0xb3   : > { %1031 = vmatpush3.bf16.msra.mxu0 %v1028_v63 }
  0xb4   : > { %v1036_v29 = vpack.c.bf16 %v260_v22, %v259_v28  ;;  %1033 = vmatprep.subr.bf16.mxu0 %v1032_v16  ;;  %v238_v34 = vpop.xlane.xlu1 %237  ;;  %v362_v28 = vld [vmem:[%s1462_s2 + $0x10] sm:$0xff] }
  0xb5   : > { %v262_v35 = vmul.f32 0.00390625, %v238_v34  ;;  %v235_v40 = vpop.xlane.xlu0 %234  ;;  %v364_v34 = vld [vmem:[%s1462_s2 + $0x20] sm:$0xff] }
  0xb6   : > { %v261_v41 = vmul.f32 0.00390625, %v235_v40  ;;  %v366_v40 = vld [vmem:[%s1462_s2 + $0x30] sm:$0xff] }
  0xb7   : > { %1035 = vmatpush3.bf16.msra.mxu0 %v1032_v16 }
  0xb8   : > { %v1040_v46 = vpack.c.bf16 %v262_v35, %v261_v41  ;;  %1037 = vmatprep.subr.bf16.mxu0 %v1036_v29  ;;  %v244_v47 = vpop.xlane.xlu1 %243  ;;  %v365_v35 = vld [vmem:[%s1462_s2 + $0x28] sm:$0xff]  ;;  %v367_v41 = vld [vmem:[%s1462_s2 + $0x38] sm:$0xff] }
  0xb9   : > { %v264_v48 = vmul.f32 0.00390625, %v244_v47  ;;  %v241_v49 = vpop.xlane.xlu0 %240  ;;  %v369_v47 = vld [vmem:[%s1462_s2 + $0x48] sm:$0xff] }
  0xba   : > { %v263_v50 = vmul.f32 0.00390625, %v241_v49  ;;  %v371_v49 = vld [vmem:[%s1462_s2 + $0x58] sm:$0xff] }
  0xbb   : > { %1039 = vmatpush3.bf16.msra.mxu0 %v1036_v29  ;;  %v363_v29 = vld [vmem:[%s1462_s2 + $0x18] sm:$0xff] }
  0xbc   : > { %v1044_v51 = vpack.c.bf16 %v264_v48, %v263_v50  ;;  %1041 = vmatprep.subr.bf16.mxu0 %v1040_v46  ;;  %v250_v52 = vpop.xlane.xlu1 %249  ;;  %v370_v48 = vld [vmem:[%s1462_s2 + $0x50] sm:$0xff]  ;;  %v372_v50 = vld [vmem:[%s1462_s2 + $0x60] sm:$0xff] }
  0xbd   : > { %v266_v53 = vmul.f32 0.00390625, %v250_v52  ;;  %v247_v54 = vpop.xlane.xlu0 %246  ;;  %v374_v52 = vld [vmem:[%s1462_s2 + $0x70] sm:$0xff] }
  0xbe   : > { %v265_v55 = vmul.f32 0.00390625, %v247_v54  ;;  %v1143_v54 = vmov 0  }
  0xbf   : > { %1043 = vmatpush3.bf16.msra.mxu0 %v1040_v46  ;;  %v368_v46 = vld [vmem:[%s1462_s2 + $0x40] sm:$0xff]  ;;  %1069 = vset.pattern.permute.xlu1 %v1143_v54 }
  0xc0   : > { %v1048_v56 = vpack.c.bf16 %v266_v53, %v265_v55  ;;  %1045 = vmatprep.subr.bf16.mxu0 %v1044_v51  ;;  %v375_v53 = vld [vmem:[%s1462_s2 + $0x78] sm:$0xff]  ;;  %1070 = vset.pattern.permute.xlu0 %v1143_v54 }
  0xc3   : > { %1047 = vmatpush3.bf16.msra.mxu0 %v1044_v51  ;;  %v373_v51 = vld [vmem:[%s1462_s2 + $0x68] sm:$0xff] }
  0xc4   : > { %1049 = vmatprep.subr.bf16.mxu0 %v1048_v56 }
  0xc7   : > { %1051 = vmatpush3.bf16.msra.mxu0 %v1048_v56 }
  0xca   : > { %983 = vmatmul.mubr.f32.vlgmr.msra.gmra.mrb[0].mxu0 %v268_v57 }
  0xcb   : > { %985 = vmatprep.mubr.f32.mxu0 %v269_v58 }
  0xce   : > { %986 = vmatmul.mubr.f32.gmra.mrb[2].mxu0 %v270_v59 }
 0x19d   : > { %v984_v61 = vpop.f32.mrb[0].mxu0 }
 0x19e   : > { %v357_v62 = vmax.f32 %v984_v61, 0.0  ;;  %v337_v63 = vpop.f32.mrb[1].mxu0 }
 0x19f   : > { %v356_v3 = vmax.f32 %v337_v63, 0.0 }
 0x1a1   : > { %v987_v7 = vpop.f32.mrb[2].mxu0  ;;  %v1052_v10 = vpack.c.bf16 %v357_v62, %v356_v3 }
 0x1a2   : > { %v359_v11 = vmax.f32 %v987_v7, 0.0  ;;  %v347_v16 = vpop.f32.mrb[3].mxu0 }
 0x1a3   : > { %v358_v17 = vmax.f32 %v347_v16, 0.0  ;;  %1053 = vmatprep.subr.bf16.mxu1 %v1052_v10 }
 0x1a4   : > { %1055 = vmatpush3.bf16.msra.mxu1 %v1052_v10 }
 0x1a5   : > { %v1056_v22 = vpack.c.bf16 %v359_v11, %v358_v17 }
 0x1a7   : > { %1057 = vmatprep.subr.bf16.mxu1 %v1056_v22 }
 0x1a8   : > { %1059 = vmatpush3.bf16.msra.mxu1 %v1056_v22 }
 0x1ab   : > { %997 = vmatmul.mubr.msk.f32.vlgmr.msra.gmra.mrb[0].mxu1 %vm376_vm0, %v361_v23 }
 0x1ac   : > { %999 = vmatprep.mubr.msk.f32.mxu1 %vm376_vm0, %v362_v28 }
 0x1af   : > { %1000 = vmatmul.mubr.msk.f32.gmra.mrb[2].mxu1 %vm376_vm0, %v363_v29 }
 0x1b0   : > { %1002 = vmatprep.mubr.msk.f32.mxu1 %vm376_vm0, %v364_v34 }
 0x1b3   : > { %1003 = vmatmul.mubr.msk.f32.gmra.mrb[4].mxu1 %vm376_vm0, %v365_v35 }
 0x1b4   : > { %1005 = vmatprep.mubr.msk.f32.mxu1 %vm376_vm0, %v366_v40 }
 0x1b7   : > { %1006 = vmatmul.mubr.msk.f32.gmra.mrb[6].mxu1 %vm376_vm0, %v367_v41 }
 0x1b8   : > { %1008 = vmatprep.mubr.msk.f32.mxu1 %vm376_vm0, %v368_v46 }
 0x1bb   : > { %1009 = vmatmul.mubr.msk.f32.gmra.mrb[8].mxu1 %vm376_vm0, %v369_v47 }
 0x1bc   : > { %1011 = vmatprep.mubr.msk.f32.mxu1 %vm376_vm0, %v370_v48 }
 0x1bf   : > { %1012 = vmatmul.mubr.msk.f32.gmra.mrb[10].mxu1 %vm376_vm0, %v371_v49 }
 0x1c0   : > { %1014 = vmatprep.mubr.msk.f32.mxu1 %vm376_vm0, %v372_v50 }
 0x1c3   : > { %1015 = vmatmul.mubr.msk.f32.gmra.mrb[12].mxu1 %vm376_vm0, %v373_v51 }
 0x1c4   : > { %1017 = vmatprep.mubr.msk.f32.mxu1 %vm376_vm0, %v374_v52 }
 0x1c7   : > { %1018 = vmatmul.mubr.msk.f32.gmra.mrb[14].mxu1 %vm376_vm0, %v375_v53 }
 0x27e   : > { %v998_v55 = vpop.f32.mrb[0].mxu1 }
 0x27f   : > { %v891_v56 = vmul.f32 -1.442695, %v998_v55  ;;  %v491_v57 = vpop.f32.mrb[1].mxu1 }
 0x280   : > { %v890_v58 = vmul.f32 -1.442695, %v491_v57 }
 0x281   : > { %1071 = vpow2.f32 %v891_v56 }
 0x282   : > { %1073 = vpow2.f32 %v890_v58  ;;  %v1001_v59 = vpop.f32.mrb[2].mxu1 }
 0x283   : > { %v893_v60 = vmul.f32 -1.442695, %v1001_v59  ;;  %v501_v61 = vpop.f32.mrb[3].mxu1 }
 0x284   : > { %v892_v62 = vmul.f32 -1.442695, %v501_v61 }
 0x285   : > { %1075 = vpow2.f32 %v893_v60 }
 0x286   : > { %1077 = vpow2.f32 %v892_v62  ;;  %v1004_v63 = vpop.f32.mrb[4].mxu1 }
 0x287   : > { %v895_v3 = vmul.f32 -1.442695, %v1004_v63  ;;  %v511_v7 = vpop.f32.mrb[5].mxu1 }
 0x288   : > { %v894_v10 = vmul.f32 -1.442695, %v511_v7 }
 0x289   : > { %1079 = vpow2.f32 %v895_v3 }
 0x28a   : > { %v1007_v11 = vpop.f32.mrb[6].mxu1  ;;  %1081 = vpow2.f32 %v894_v10 }
 0x28b   : > { %v1072_v16 = vpop.eup %1071  ;;  %v897_v17 = vmul.f32 -1.442695, %v1007_v11  ;;  %v521_v22 = vpop.f32.mrb[7].mxu1 }
 0x28c   : > { %v1074_v23 = vpop.eup %1073  ;;  %v619_v28 = vadd.f32 1.0, %v1072_v16  ;;  %v896_v48 = vmul.f32 -1.442695, %v521_v22 }
 0x28d   : > { %v618_v29 = vadd.f32 1.0, %v1074_v23  ;;  %1083 = vpow2.f32 %v897_v17 }
 0x28e   : > { %1085 = vrcp.f32 %v619_v28  ;;  %v1010_v34 = vpop.f32.mrb[8].mxu1 }
 0x28f   : > { %v1076_v35 = vpop.eup %1075  ;;  %1087 = vrcp.f32 %v618_v29  ;;  %v899_v40 = vmul.f32 -1.442695, %v1010_v34  ;;  %v531_v41 = vpop.f32.mrb[9].mxu1 }
 0x290   : > { %v1078_v46 = vpop.eup %1077  ;;  %v621_v47 = vadd.f32 1.0, %v1076_v35  ;;  %v898_v52 = vmul.f32 -1.442695, %v531_v41 }
 0x291   : > { %1089 = vpow2.f32 %v899_v40  ;;  %v620_v49 = vadd.f32 1.0, %v1078_v46 }
 0x292   : > { %1091 = vrcp.f32 %v621_v47  ;;  %v1013_v50 = vpop.f32.mrb[10].mxu1 }
 0x293   : > { %v1080_v51 = vpop.eup %1079  ;;  %v901_v53 = vmul.f32 -1.442695, %v1013_v50  ;;  %v541_v54 = vpop.f32.mrb[11].mxu1  ;;  %1093 = vpow2.f32 %v896_v48 }
 0x294   : > { %v623_v55 = vadd.f32 1.0, %v1080_v51  ;;  %v1082_v56 = vpop.eup %1081  ;;  %v900_v57 = vmul.f32 -1.442695, %v541_v54 }
 0x295   : > { %1095 = vpow2.f32 %v901_v53  ;;  %v622_v63 = vadd.f32 1.0, %v1082_v56 }
 0x296   : > { %1097 = vrcp.f32 %v620_v49  ;;  %v1016_v58 = vpop.f32.mrb[12].mxu1 }
 0x297   : > { %v1084_v59 = vpop.eup %1083  ;;  %1099 = vpow2.f32 %v898_v52  ;;  %v903_v60 = vmul.f32 -1.442695, %v1016_v58  ;;  %v551_v61 = vpop.f32.mrb[13].mxu1 }
 0x298   : > { %v1086_v62 = vpop.eup %1085  ;;  %1101 = vrcp.f32 %v623_v55  ;;  %v902_v7 = vmul.f32 -1.442695, %v551_v61  ;;  %v625_v23 = vadd.f32 1.0, %v1084_v59 }
 0x299   : > { %v1088_v3 = vpop.eup %1087  ;;  %1103 = vpow2.f32 %v903_v60  ;;  %673 = vperm.xlu1 %1069, %v1086_v62  }
 0x29a   : > { %1105 = vpow2.f32 %v900_v57  ;;  %668 = vperm.xlu0 %1070, %v1088_v3   ;;  %v1019_v10 = vpop.f32.mrb[14].mxu1 }
 0x29b   : > { %v1090_v11 = vpop.eup %1089  ;;  %v905_v16 = vmul.f32 -1.442695, %v1019_v10  ;;  %v561_v17 = vpop.f32.mrb[15].mxu1  ;;  %1107 = vrcp.f32 %v622_v63 }
 0x29c   : > { %v1092_v22 = vpop.eup %1091  ;;  %v627_v28 = vadd.f32 1.0, %v1090_v11  ;;  %1109 = vpow2.f32 %v902_v7  ;;  %v904_v35 = vmul.f32 -1.442695, %v561_v17 }
 0x29d   : > { %683 = vperm.xlu1 %1069, %v1092_v22   ;;  %v1094_v29 = vpop.eup %1093 }
 0x29e   : > { %1111 = vrcp.f32 %v627_v28  ;;  %v624_v47 = vadd.f32 1.0, %v1094_v29 }
 0x29f   : > { %v1096_v34 = vpop.eup %1095  ;;  %1113 = vpow2.f32 %v905_v16 }
 0x2a0   : > { %v1098_v40 = vpop.eup %1097  ;;  %1115 = vrcp.f32 %v625_v23  ;;  %v629_v41 = vadd.f32 1.0, %v1096_v34 }
 0x2a1   : > { %v1100_v46 = vpop.eup %1099  ;;  %678 = vperm.xlu1 %1069, %v1098_v40  }
 0x2a2   : > { %v1102_v48 = vpop.eup %1101  ;;  %1117 = vrcp.f32 %v629_v41  ;;  %v626_v51 = vadd.f32 1.0, %v1100_v46 }
 0x2a3   : > { %v1104_v49 = vpop.eup %1103  ;;  %1119 = vpow2.f32 %v904_v35 }
 0x2a4   : > { %v1106_v50 = vpop.eup %1105  ;;  %v631_v52 = vadd.f32 1.0, %v1104_v49  ;;  %1121 = vrcp.f32 %v624_v47 }
 0x2a5   : > { %693 = vperm.xlu1 %1069, %v1102_v48   ;;  %v1108_v53 = vpop.eup %1107  ;;  %v628_v55 = vadd.f32 1.0, %v1106_v50 }
 0x2a6   : > { %1123 = vrcp.f32 %v631_v52  ;;  %v1110_v54 = vpop.eup %1109 }
 0x2a7   : > { %1125 = vrcp.f32 %v626_v51  ;;  %v630_v61 = vadd.f32 1.0, %v1110_v54 }
 0x2a8   : > { %v1112_v56 = vpop.eup %1111  ;;  %1127 = vrcp.f32 %v628_v55 }
 0x2a9   : > { %v1114_v57 = vpop.eup %1113  ;;  %688 = vperm.xlu1 %1069, %v1108_v53   ;;  %713 = vperm.xlu0 %1070, %v1112_v56  }
 0x2aa   : > { %v1116_v58 = vpop.eup %1115  ;;  %v633_v59 = vadd.f32 1.0, %v1114_v57 }
 0x2ac   : > { %v1118_v60 = vpop.eup %1117  ;;  %1129 = vrcp.f32 %v633_v59 }
 0x2ad   : > { %v1120_v62 = vpop.eup %1119  ;;  %703 = vperm.xlu1 %1069, %v1116_v58   ;;  %723 = vperm.xlu0 %1070, %v1118_v60   ;;  %1131 = vrcp.f32 %v630_v61 }
 0x2ae   : > { %v1122_v63 = vpop.eup %1121  ;;  %v632_v7 = vadd.f32 1.0, %v1120_v62 }
 0x2b0   : > { %v1124_v3 = vpop.eup %1123  ;;  %1133 = vrcp.f32 %v632_v7 }
 0x2b1   : > { %698 = vperm.xlu1 %1069, %v1122_v63   ;;  %733 = vperm.xlu0 %1070, %v1124_v3   ;;  %v1126_v10 = vpop.eup %1125 }
 0x2b2   : > { %v1128_v11 = vpop.eup %1127 }
 0x2b5   : > { %708 = vperm.xlu1 %1069, %v1126_v10  }
 0x2b6   : > { %v1130_v16 = vpop.eup %1129 }
 0x2b7   : > { %743 = vperm.xlu0 %1070, %v1130_v16   ;;  %v1132_v17 = vpop.eup %1131 }
 0x2b9   : > { %718 = vperm.xlu1 %1069, %v1128_v11  }
 0x2ba   : > { %v1134_v22 = vpop.eup %1133 }
 0x2bd   : > { %728 = vperm.xlu1 %1069, %v1132_v17  }
 0x2c1   : > { %738 = vperm.xlu1 %1069, %v1134_v22  }
 0x318   : > { %v674_v23 = vpop.permute.xlu1 %673 }
 0x319   : > { %v748_v28 = vmul.f32 %v674_v23, %v1205_v8  ;;  %v749_v29 = vmul.f32 %v674_v23, %v1208_v9  ;;  %v669_v34 = vpop.permute.xlu0 %668 }
 0x31a   : > { %v746_v35 = vmul.f32 %v669_v34, %v1189_v2  ;;  %v747_v40 = vmul.f32 %v669_v34, %v1194_v4 }
 0x31b   : > { %780 = vst [vmem:[%s1391_s9 + $0x10] sm:$0xff] %v748_v28  ;;  %781 = vst [vmem:[%s1391_s9 + $0x18] sm:$0xff] %v749_v29 }
 0x31c   : > { %778 = vst [vmem:[%s1391_s9] sm:$0xff] %v746_v35  ;;  %779 = vst [vmem:[%s1391_s9 + $0x8] sm:$0xff] %v747_v40  ;;  %v684_v41 = vpop.permute.xlu1 %683 }
 0x31d   : > { %v752_v46 = vmul.f32 %v684_v41, %v1197_v5  ;;  %v753_v8 = vmul.f32 %v684_v41, %v1200_v6 }
 0x31f   : > { %784 = vst [vmem:[%s1391_s9 + $0x30] sm:$0xff] %v752_v46  ;;  %785 = vst [vmem:[%s1391_s9 + $0x38] sm:$0xff] %v753_v8 }
 0x320   : > { %v679_v9 = vpop.permute.xlu1 %678 }
 0x321   : > { %v750_v47 = vmul.f32 %v679_v9, %v1183_v0  ;;  %v751_v2 = vmul.f32 %v679_v9, %v1186_v1 }
 0x323   : > { %782 = vst [vmem:[%s1391_s9 + $0x20] sm:$0xff] %v750_v47  ;;  %783 = vst [vmem:[%s1391_s9 + $0x28] sm:$0xff] %v751_v2 }
 0x324   : > { %v694_v4 = vpop.permute.xlu1 %693 }
 0x325   : > { %v756_v48 = vmul.f32 %v694_v4, %v1215_v12  ;;  %v757_v5 = vmul.f32 %v694_v4, %v1218_v13 }
 0x327   : > { %788 = vst [vmem:[%s1391_s9 + $0x50] sm:$0xff] %v756_v48  ;;  %789 = vst [vmem:[%s1391_s9 + $0x58] sm:$0xff] %v757_v5 }
 0x328   : > { %v689_v6 = vpop.permute.xlu1 %688  ;;  %v714_v49 = vpop.permute.xlu0 %713 }
 0x329   : > { %v754_v0 = vmul.f32 %v689_v6, %v1221_v14  ;;  %v755_v1 = vmul.f32 %v689_v6, %v1224_v15  ;;  %v764_v50 = vmul.f32 %v714_v49, %v1247_v24  ;;  %v765_v51 = vmul.f32 %v714_v49, %v1250_v25 }
 0x32b   : > { %786 = vst [vmem:[%s1391_s9 + $0x40] sm:$0xff] %v754_v0  ;;  %787 = vst [vmem:[%s1391_s9 + $0x48] sm:$0xff] %v755_v1 }
 0x32c   : > { %796 = vst [vmem:[%s1391_s9 + $0x90] sm:$0xff] %v764_v50  ;;  %797 = vst [vmem:[%s1391_s9 + $0x98] sm:$0xff] %v765_v51  ;;  %v704_v12 = vpop.permute.xlu1 %703  ;;  %v724_v13 = vpop.permute.xlu0 %723 }
 0x32d   : > { %v760_v52 = vmul.f32 %v704_v12, %v1231_v18  ;;  %v761_v14 = vmul.f32 %v704_v12, %v1234_v19  ;;  %v768_v15 = vmul.f32 %v724_v13, %v1263_v30  ;;  %v769_v24 = vmul.f32 %v724_v13, %v1266_v31 }
 0x32f   : > { %792 = vst [vmem:[%s1391_s9 + $0x70] sm:$0xff] %v760_v52  ;;  %793 = vst [vmem:[%s1391_s9 + $0x78] sm:$0xff] %v761_v14 }
 0x330   : > { %800 = vst [vmem:[%s1391_s9 + $0xb0] sm:$0xff] %v768_v15  ;;  %801 = vst [vmem:[%s1391_s9 + $0xb8] sm:$0xff] %v769_v24  ;;  %v699_v25 = vpop.permute.xlu1 %698  ;;  %v734_v53 = vpop.permute.xlu0 %733 }
 0x331   : > { %v758_v54 = vmul.f32 %v699_v25, %v1237_v20  ;;  %v759_v18 = vmul.f32 %v699_v25, %v1240_v21  ;;  %v772_v19 = vmul.f32 %v734_v53, %v1279_v36  ;;  %v773_v30 = vmul.f32 %v734_v53, %v1282_v37 }
 0x333   : > { %790 = vst [vmem:[%s1391_s9 + $0x60] sm:$0xff] %v758_v54  ;;  %791 = vst [vmem:[%s1391_s9 + $0x68] sm:$0xff] %v759_v18 }
 0x334   : > { %804 = vst [vmem:[%s1391_s9 + $0xd0] sm:$0xff] %v772_v19  ;;  %805 = vst [vmem:[%s1391_s9 + $0xd8] sm:$0xff] %v773_v30  ;;  %v709_v31 = vpop.permute.xlu1 %708 }
 0x335   : > { %v762_v55 = vmul.f32 %v709_v31, %v1253_v26  ;;  %v763_v56 = vmul.f32 %v709_v31, %v1256_v27 }
 0x336   : > { %v744_v20 = vpop.permute.xlu0 %743 }
 0x337   : > { %794 = vst [vmem:[%s1391_s9 + $0x80] sm:$0xff] %v762_v55  ;;  %795 = vst [vmem:[%s1391_s9 + $0x88] sm:$0xff] %v763_v56  ;;  %v776_v21 = vmul.f32 %v744_v20, %v1295_v42  ;;  %v777_v36 = vmul.f32 %v744_v20, %v1298_v43 }
 0x338   : > { %v719_v37 = vpop.permute.xlu1 %718 }
 0x339   : > { %808 = vst [vmem:[%s1391_s9 + $0xf0] sm:$0xff] %v776_v21  ;;  %809 = vst [vmem:[%s1391_s9 + $0xf8] sm:$0xff] %v777_v36  ;;  %v766_v57 = vmul.f32 %v719_v37, %v1269_v32  ;;  %v767_v26 = vmul.f32 %v719_v37, %v1272_v33 }
 0x33b   : > { %798 = vst [vmem:[%s1391_s9 + $0xa0] sm:$0xff] %v766_v57  ;;  %799 = vst [vmem:[%s1391_s9 + $0xa8] sm:$0xff] %v767_v26 }
 0x33c   : > { %v729_v27 = vpop.permute.xlu1 %728 }
 0x33d   : > { %v770_v58 = vmul.f32 %v729_v27, %v1285_v38  ;;  %v771_v59 = vmul.f32 %v729_v27, %v1288_v39 }
 0x33f   : > { %802 = vst [vmem:[%s1391_s9 + $0xc0] sm:$0xff] %v770_v58  ;;  %803 = vst [vmem:[%s1391_s9 + $0xc8] sm:$0xff] %v771_v59 }
 0x340   : > { %v739_v42 = vpop.permute.xlu1 %738 }
 0x341   : > { %v774_v43 = vmul.f32 %v739_v42, %v1301_v44  ;;  %v775_v60 = vmul.f32 %v739_v42, %v1304_v45 }
 0x343   : > { %806 = vst [vmem:[%s1391_s9 + $0xe0] sm:$0xff] %v774_v43  ;;  %807 = vst [vmem:[%s1391_s9 + $0xe8] sm:$0xff] %v775_v60 }
 0x344 PF: > { %s13_s12 = sadd.s32 1, %s1141_s12  }
 0x345   : > { %p10_p4 = scmp.ge.s32.totalorder %s13_s12, 4  }
 0x347   :  { %12 = sbr.rel (!%p10_p4) target bundleno = 1 (0x1), region = 62 }

</bundles_post_ra>
